<compile_context>
chip_gen: v5e
topology: v5e:2x2
jax: 0.10.0
libtpu: 0.0.40
codegen_flags: <defaults>
</compile_context>

<pallas_src>
import jax
import jax.numpy as jnp
from jax.experimental import pallas as pl
from jax.experimental.pallas import tpu as pltpu


def mlp_kernel(x_ref, w1_ref, b1_ref, w2_ref, b2_ref, w3t_ref, b3_ref, o_ref):
    """One batch tile of sigmoid(relu(relu(x@W1+b1)@W2+b2)@W3+b3)."""
    # x tile: (TILE_B, 52) float32 straight from HBM; cast to bf16 for the MXU only.
    x = x_ref[...].astype(jnp.bfloat16)
    # Layer 1: bf16 MXU matmul, f32 accumulation, f32 bias + ReLU on the VPU.
    h1 = jnp.dot(x, w1_ref[...], preferred_element_type=jnp.float32)       # (TILE_B, 64)
    h1 = jnp.maximum(h1 + b1_ref[...], 0.0)
    # Layer 2: cast activations to bf16 for the MXU, accumulate in f32.
    h2 = jnp.dot(h1.astype(jnp.bfloat16), w2_ref[...],
                 preferred_element_type=jnp.float32)                        # (TILE_B, 32)
    h2 = jnp.maximum(h2 + b2_ref[...], 0.0)
    # Layer 3, lane-dense: transpose so batch sits on lanes, then a tiny f32
    # (1,32)x(32,TILE_B) contraction gives a (1, TILE_B) row of logits. Keeps the
    # output store wide/unmasked instead of a (TILE_B, 1) column of masked stores.
    h2t = jnp.transpose(h2)                                                 # (32, TILE_B)
    z = jnp.dot(w3t_ref[...], h2t,
                preferred_element_type=jnp.float32) + b3_ref[...]           # (1, TILE_B)
    o_ref[...] = jax.nn.sigmoid(z)


def init_params(key, input_dim=52):
    """Deterministic synthetic parameters with nn.Linear-style uniform init.
    Stored as (in, out) so the forward pass is x @ W + b (transposed vs. PyTorch)."""
    def linear(key, fan_in, fan_out):
        kw, kb = jax.random.split(key)
        bound = 1.0 / jnp.sqrt(float(fan_in))
        w = jax.random.uniform(kw, (fan_in, fan_out), jnp.float32, -bound, bound)
        b = jax.random.uniform(kb, (1, fan_out), jnp.float32, -bound, bound)
        return w, b

    k1, k2, k3 = jax.random.split(key, 3)
    w1, b1 = linear(k1, input_dim, 64)
    w2, b2 = linear(k2, 64, 32)
    w3, b3 = linear(k3, 32, 1)
    return (w1, b1, w2, b2, w3, b3)


def prepare_params(params):
    """One-time, tiny host-side prep (weights only; x is never touched):
    cast the two MXU weights to bf16, lay fc3's weight out as a (1, 32) f32 row for
    the transposed (lane-dense) final layer. Biases / fc3 stay f32 (VPU/MXU-f32 path)."""
    w1, b1, w2, b2, w3, b3 = params
    return (w1.astype(jnp.bfloat16), b1,
            w2.astype(jnp.bfloat16), b2,
            jnp.transpose(w3), b3)          # w3t: (1, 32) f32, b3: (1, 1) f32


def _round_up(n, m):
    return ((n + m - 1) // m) * m


def lead_scoring_forward(x, prepared_params, *, tile_b=8192):
    """x: (B, input_dim) float32. Returns (B,) scores (matches PyTorch x.squeeze())."""
    w1, b1, w2, b2, w3t, b3 = prepared_params
    B, in_dim = x.shape
    assert in_dim == w1.shape[0]
    hidden1, hidden2 = w1.shape[1], w2.shape[1]

    # ---- batch-tile selection -------------------------------------------------
    # Big tiles (MiB-scale x blocks) amortize the ~0.35us/grid-step overhead; tiny
    # batches stay a single small block; medium batches split into >= 2 grid steps
    # so the "parallel" axis can feed both v7x TensorCores. tile_b is a multiple of
    # 128 whenever num_tiles > 1 (it is the lane dim of the output block).
    if B <= 256:
        tile_b = _round_up(B, 8)                                   # single block
    else:
        tile_b = _round_up(tile_b, 128)
        tile_b = min(tile_b, _round_up(pl.cdiv(B, 2), 128))        # >= 2 grid steps
    num_tiles = pl.cdiv(B, tile_b)
    b_pad = num_tiles * tile_b

    # Only tiny batches ever get host-padded (cheap). Large ragged batches rely on
    # Pallas' partial-last-block handling: the stale rows in the last x block produce
    # garbage scores in the padded output region, which is sliced off below.
    if b_pad != B and B <= 256:
        x = jnp.zeros((b_pad, in_dim), x.dtype).at[:B, :].set(x)

    out = pl.pallas_call(
        mlp_kernel,
        out_shape=jax.ShapeDtypeStruct((1, b_pad), jnp.float32),
        grid=(num_tiles,),
        in_specs=[
            pl.BlockSpec((tile_b, in_dim), lambda i: (i, 0)),      # x: streamed f32 per tile
            pl.BlockSpec((in_dim, hidden1), lambda i: (0, 0)),     # w1 (bf16): resident
            pl.BlockSpec((1, hidden1), lambda i: (0, 0)),          # b1: resident
            pl.BlockSpec((hidden1, hidden2), lambda i: (0, 0)),    # w2 (bf16): resident
            pl.BlockSpec((1, hidden2), lambda i: (0, 0)),          # b2: resident
            pl.BlockSpec((1, hidden2), lambda i: (0, 0)),          # w3^T: resident
            pl.BlockSpec((1, 1), lambda i: (0, 0)),                # b3: resident
        ],
        out_specs=pl.BlockSpec((1, tile_b), lambda i: (0, i)),
        compiler_params=pltpu.CompilerParams(
            dimension_semantics=("parallel",),
            vmem_limit_bytes=48 * 1024 * 1024,
        ),
    )(x, w1, b1, w2, b2, w3t, b3)

    # (1, b_pad) -> (B,), dropping any batch padding.
    return out.reshape(b_pad)[:B]


def _references(x, params):
    """(tight) bf16-mirrored reference and (loose) exact-f32 PyTorch reference."""
    w1, b1, w2, b2, w3, b3 = params
    f32 = lambda a: a.astype(jnp.float32)
    with jax.default_matmul_precision("highest"):
        # Mirrors the kernel's bf16 MXU inputs (x, w1, h1, w2); f32 everywhere else.
        xb = f32(x.astype(jnp.bfloat16))
        h1 = jnp.maximum(jnp.dot(xb, f32(w1.astype(jnp.bfloat16))) + b1, 0.0)
        h2 = jnp.maximum(jnp.dot(f32(h1.astype(jnp.bfloat16)),
                                 f32(w2.astype(jnp.bfloat16))) + b2, 0.0)
        ref_bf16 = jax.nn.sigmoid(jnp.dot(h2, w3) + b3).reshape(-1)
        # Exact-f32 forward (what the PyTorch module computes).
        h1f = jnp.maximum(jnp.dot(x, w1) + b1, 0.0)
        h2f = jnp.maximum(jnp.dot(h1f, w2) + b2, 0.0)
        ref_f32 = jax.nn.sigmoid(jnp.dot(h2f, w3) + b3).reshape(-1)
    return ref_bf16, ref_f32


if __name__ == "__main__":
    key = jax.random.PRNGKey(0)
    kx, kx2, kp = jax.random.split(key, 3)

    input_dim = 52
    params = init_params(kp, input_dim=input_dim)
    prepared = prepare_params(params)

    # Small batch (single small block path).
    x_small = jax.random.normal(kx, (8, input_dim), dtype=jnp.float32)
    out_small = lead_scoring_forward(x_small, prepared)
    jax.block_until_ready(out_small)

    # Medium batch (multi-tile "parallel" grid + partial last block path).
    x_med = jax.random.normal(kx2, (1000, input_dim), dtype=jnp.float32)
    out_med = lead_scoring_forward(x_med, prepared)
    jax.block_until_ready(out_med)

    for x_in, out in ((x_small, out_small), (x_med, out_med)):
        ref_bf16, ref_f32 = _references(x_in, params)
        assert out.shape == (x_in.shape[0],)
        # Tight check vs. a reference that mirrors the kernel's bf16 MXU rounding.
        assert jnp.allclose(out, ref_bf16, atol=2e-3, rtol=2e-3), (out, ref_bf16)
        # Loose check vs. the exact-f32 PyTorch forward (bf16 MXU inputs -> O(1e-3)).
        assert jnp.allclose(out, ref_f32, atol=3e-2), (out, ref_f32)

    print("KERNEL_OK")
</pallas_src>

<mosaic_0001>
module attributes {stable_mosaic.version = 11 : i64} {
  func.func @mlp_kernel(%arg0: i32, %arg1: memref<8x52xf32, #tpu.memory_space<vmem>>, %arg2: memref<52x64xbf16, #tpu.memory_space<vmem>>, %arg3: memref<1x64xf32, #tpu.memory_space<vmem>>, %arg4: memref<64x32xbf16, #tpu.memory_space<vmem>>, %arg5: memref<1x32xf32, #tpu.memory_space<vmem>>, %arg6: memref<1x32xf32, #tpu.memory_space<vmem>>, %arg7: memref<1x1xf32, #tpu.memory_space<vmem>>, %arg8: memref<1x8xf32, #tpu.memory_space<vmem>>) attributes {dimension_semantics = [#tpu.dimension_semantics<parallel>], iteration_bounds = array<i64: 1>, scalar_prefetch = 0 : i64, scratch_operands = 0 : i64, tpu.core_type = #tpu.core_type<tc>, window_params = [{transform_indices = @transform_0, window_bounds = array<i64: 8, 52>}, {pipeline_mode = #tpu.pipeline_mode<synchronous>, transform_indices = @transform_1, window_bounds = array<i64: 52, 64>}, {pipeline_mode = #tpu.pipeline_mode<synchronous>, transform_indices = @transform_2, window_bounds = array<i64: 1, 64>}, {pipeline_mode = #tpu.pipeline_mode<synchronous>, transform_indices = @transform_3, window_bounds = array<i64: 64, 32>}, {pipeline_mode = #tpu.pipeline_mode<synchronous>, transform_indices = @transform_4, window_bounds = array<i64: 1, 32>}, {pipeline_mode = #tpu.pipeline_mode<synchronous>, transform_indices = @transform_5, window_bounds = array<i64: 1, 32>}, {pipeline_mode = #tpu.pipeline_mode<synchronous>, transform_indices = @transform_6, window_bounds = array<i64: 1, 1>}, {transform_indices = @transform_7, window_bounds = array<i64: 1, 8>}]} {
    %c0 = arith.constant 0 : index
    %c0_0 = arith.constant 0 : index
    %0 = vector.load %arg1[%c0, %c0_0] : memref<8x52xf32, #tpu.memory_space<vmem>>, vector<8x52xf32>
    %1 = arith.truncf %0 : vector<8x52xf32> to vector<8x52xbf16>
    %c0_1 = arith.constant 0 : index
    %c0_2 = arith.constant 0 : index
    %2 = vector.load %arg2[%c0_1, %c0_2] : memref<52x64xbf16, #tpu.memory_space<vmem>>, vector<52x64xbf16>
    %cst = arith.constant dense<0.000000e+00> : vector<8x64xf32>
    %3 = tpu.matmul %1, %2, %cst {dimension_numbers = #tpu.dot_dimension_numbers<[1], [0], [0], [1], [0, 0, 1, 1], [], []>} : vector<8x52xbf16>, vector<52x64xbf16>, vector<8x64xf32> -> vector<8x64xf32>
    %c0_3 = arith.constant 0 : index
    %c0_4 = arith.constant 0 : index
    %4 = vector.load %arg3[%c0_3, %c0_4] : memref<1x64xf32, #tpu.memory_space<vmem>>, vector<1x64xf32>
    %5 = vector.broadcast %4 : vector<1x64xf32> to vector<8x64xf32>
    %6 = arith.addf %3, %5 : vector<8x64xf32>
    %cst_5 = arith.constant 0.000000e+00 : f32
    %7 = vector.broadcast %cst_5 : f32 to vector<8x64xf32>
    %8 = arith.maximumf %6, %7 : vector<8x64xf32>
    %9 = arith.truncf %8 : vector<8x64xf32> to vector<8x64xbf16>
    %c0_6 = arith.constant 0 : index
    %c0_7 = arith.constant 0 : index
    %10 = vector.load %arg4[%c0_6, %c0_7] : memref<64x32xbf16, #tpu.memory_space<vmem>>, vector<64x32xbf16>
    %cst_8 = arith.constant dense<0.000000e+00> : vector<8x32xf32>
    %11 = tpu.matmul %9, %10, %cst_8 {dimension_numbers = #tpu.dot_dimension_numbers<[1], [0], [0], [1], [0, 0, 1, 1], [], []>} : vector<8x64xbf16>, vector<64x32xbf16>, vector<8x32xf32> -> vector<8x32xf32>
    %c0_9 = arith.constant 0 : index
    %c0_10 = arith.constant 0 : index
    %12 = vector.load %arg5[%c0_9, %c0_10] : memref<1x32xf32, #tpu.memory_space<vmem>>, vector<1x32xf32>
    %13 = vector.broadcast %12 : vector<1x32xf32> to vector<8x32xf32>
    %14 = arith.addf %11, %13 : vector<8x32xf32>
    %cst_11 = arith.constant 0.000000e+00 : f32
    %15 = vector.broadcast %cst_11 : f32 to vector<8x32xf32>
    %16 = arith.maximumf %14, %15 : vector<8x32xf32>
    %17 = tpu.transpose %16, [1, 0] : vector<8x32xf32> -> vector<32x8xf32>
    %c0_12 = arith.constant 0 : index
    %c0_13 = arith.constant 0 : index
    %18 = vector.load %arg6[%c0_12, %c0_13] : memref<1x32xf32, #tpu.memory_space<vmem>>, vector<1x32xf32>
    %cst_14 = arith.constant dense<0.000000e+00> : vector<1x8xf32>
    %19 = tpu.matmul %18, %17, %cst_14 {dimension_numbers = #tpu.dot_dimension_numbers<[1], [0], [0], [1], [0, 0, 1, 1], [], []>} : vector<1x32xf32>, vector<32x8xf32>, vector<1x8xf32> -> vector<1x8xf32>
    %c0_15 = arith.constant 0 : index
    %c0_16 = arith.constant 0 : index
    %20 = vector.load %arg7[%c0_15, %c0_16] : memref<1x1xf32, #tpu.memory_space<vmem>>, vector<1x1xf32>
    %21 = vector.broadcast %20 : vector<1x1xf32> to vector<1x8xf32>
    %22 = arith.addf %19, %21 : vector<1x8xf32>
    %23 = arith.negf %22 : vector<1x8xf32>
    %24 = math.exp %23 : vector<1x8xf32>
    %cst_17 = arith.constant 1.000000e+00 : f32
    %25 = vector.broadcast %cst_17 : f32 to vector<1x8xf32>
    %26 = arith.addf %25, %24 : vector<1x8xf32>
    %27 = arith.divf %25, %26 : vector<1x8xf32>
    %c0_18 = arith.constant 0 : index
    %c0_19 = arith.constant 0 : index
    %28 = vector.load %arg8[%c0_18, %c0_19] : memref<1x8xf32, #tpu.memory_space<vmem>>, vector<1x8xf32>
    tpu.vector_store %arg8[%c0_18, %c0_19], %27 {strides = array<i32>} : memref<1x8xf32, #tpu.memory_space<vmem>>, vector<1x8xf32>,
    return
  }
  func.func @transform_0(%arg0: i32) -> (i32, i32) {
    %c0_i32 = arith.constant 0 : i32
    %c0_i32_0 = arith.constant 0 : i32
    return %arg0, %c0_i32 : i32, i32
  }
  func.func @transform_1(%arg0: i32) -> (i32, i32) {
    %c0_i32 = arith.constant 0 : i32
    %c0_i32_0 = arith.constant 0 : i32
    %c0_i32_1 = arith.constant 0 : i32
    return %c0_i32, %c0_i32_0 : i32, i32
  }
  func.func @transform_2(%arg0: i32) -> (i32, i32) {
    %c0_i32 = arith.constant 0 : i32
    %c0_i32_0 = arith.constant 0 : i32
    %c0_i32_1 = arith.constant 0 : i32
    return %c0_i32, %c0_i32_0 : i32, i32
  }
  func.func @transform_3(%arg0: i32) -> (i32, i32) {
    %c0_i32 = arith.constant 0 : i32
    %c0_i32_0 = arith.constant 0 : i32
    %c0_i32_1 = arith.constant 0 : i32
    return %c0_i32, %c0_i32_0 : i32, i32
  }
  func.func @transform_4(%arg0: i32) -> (i32, i32) {
    %c0_i32 = arith.constant 0 : i32
    %c0_i32_0 = arith.constant 0 : i32
    %c0_i32_1 = arith.constant 0 : i32
    return %c0_i32, %c0_i32_0 : i32, i32
  }
  func.func @transform_5(%arg0: i32) -> (i32, i32) {
    %c0_i32 = arith.constant 0 : i32
    %c0_i32_0 = arith.constant 0 : i32
    %c0_i32_1 = arith.constant 0 : i32
    return %c0_i32, %c0_i32_0 : i32, i32
  }
  func.func @transform_6(%arg0: i32) -> (i32, i32) {
    %c0_i32 = arith.constant 0 : i32
    %c0_i32_0 = arith.constant 0 : i32
    %c0_i32_1 = arith.constant 0 : i32
    return %c0_i32, %c0_i32_0 : i32, i32
  }
  func.func @transform_7(%arg0: i32) -> (i32, i32) {
    %c0_i32 = arith.constant 0 : i32
    %c0_i32_0 = arith.constant 0 : i32
    return %c0_i32, %arg0 : i32, i32
  }
}

</mosaic_0001>

<bundles_post_ra>
// kernel: tpu_custom_call.1
= control target key start
LH: loop header
LB: loop body
LE: loop exit
PB: predicated region body
PF: predicated region fallthrough
CT: control target
= control target key end

     0   :  { %s372_s0 = inlined_call_operand.vmem [shape: f32[8,52], index: 0, kind: input, shape index: {}]   ;;  %s373_s1 = inlined_call_operand.vmem [shape: bf16[52,64], index: 1, kind: input, shape index: {}]   ;;  %s374_s2 = inlined_call_operand.vmem [shape: f32[1,64], index: 2, kind: input, shape index: {}]   ;;  %s375_s3 = inlined_call_operand.vmem [shape: bf16[64,32], index: 3, kind: input, shape index: {}]   ;;  %s376_s4 = inlined_call_operand.vmem [shape: f32[1,32], index: 4, kind: input, shape index: {}]   ;;  %s377_s5 = inlined_call_operand.vmem [shape: f32[1,32], index: 5, kind: input, shape index: {}]   ;;  %s378_s6 = inlined_call_operand.<no memory space> [shape: f32[1,1], index: 6, kind: input, shape index: {}]   ;;  %s379_s7 = inlined_call_operand.hbm [shape: f32[1,8], index: 7, kind: output, shape index: {}]  }
   0x1   :  { %v12_v0 = vstv %s378_s6 }
   0x2   :  { %13 = vst [vmem:[#allocation2] sm:$0x1] %v12_v0 }
   0x3   :  { %v38_v1 = vld [vmem:[%s373_s1 + $0x18] sm:$0x3]  ;;  %vm68_vm0 = vcmask 1041408   ;;  %v251_v5 = vld [vmem:[%s375_s3 + $0x10] sm:$0xff] }
   0x4   :  { %v56_v2 = vunpack.c.l.b16 %v38_v1  ;;  %v252_v3 = vld [vmem:[%s375_s3 + $0x18] sm:$0xff] }
   0x5   :  { %131 = vmatpush.bf16.msra.mxu1 %v252_v3 }
   0x6   :  { %v60_v4 = vpack.c.b16 %v56_v2, %v56_v2 }
   0x7   :  { %14 = vsyncpa [#allocation4], 0  ;;  %v248_v7 = vld [vmem:[%s373_s1 + $0x10] sm:$0xff]  ;;  %v247_v8 = vld [vmem:[%s373_s1 + $0x8] sm:$0xff]  ;;  %vm64_vm1 = vcmask 424960   ;;  %vm123_vm2 = vcmask 523264  }
   0x8   :  { %v70_v6 = vsel %vm68_vm0, %v60_v4, 0  ;;  %v246_v9 = vld [vmem:[%s373_s1] sm:$0xff]  ;;  %v250_v12 = vld [vmem:[%s375_s3 + $0x8] sm:$0xff]  ;;  %v288_v21 = vmov 0   ;;  %vm149_vm3 = vcmask 261120   ;;  %s204_s24 = sshll.u32 %s379_s7, 4  ;;  %s205_s24 = int_to_ptr.hbm [resolvable:$true] %s204_s24 }
   0x9   :  { %76 = vmatpush.bf16.msra.mxu0 %v70_v6  ;;  %132 = vmatpush.bf16.msra.mxu1 %v251_v5  ;;  %v30_v10 = vld [vmem:[%s372_s0] sm:$0xff]  ;;  %vm195_vm7 = vcmask 57344  }
   0xa   :  { %v31_v11 = vpack.c.bf16 %v30_v10, %v30_v10  ;;  %v249_v13 = vld [vmem:[%s375_s3] sm:$0xff]  ;;  %255 = vset.pattern.permute.xlu0 %v288_v21 }
   0xb   :  { %v256_v14 = vld [vmem:[%s374_s2] ss:$0 sm:$0xff] }
   0xc   :  { %v142_v20 = vld [vmem:[#allocation2] sm:$0x1] }
   0xd   :  { %77 = vmatpush.bf16.msra.mxu0 %v248_v7  ;;  %133 = vmatpush.bf16.msra.mxu1 %v250_v12  ;;  %v257_v22 = vld [vmem:[%s376_s4] ss:$0 sm:$0xff]  ;;  %s289_s4 = smov [#allocation3]  }
   0xe   :  { %145 = vperm.xlu0 %255, %v142_v20   ;;  %v141_v26 = vld [vmem:[%s377_s5] sm:$0x1]  ;;  %s202_s5 = sshll.u32 %s289_s4, 4  ;;  %s203_s5 = int_to_ptr.vmem [resolvable:$true] %s202_s5 }
  0x11   :  { %78 = vmatpush.bf16.msra.mxu0 %v247_v8  ;;  %134 = vmatpush.bf16.msra.mxu1 %v249_v13 }
  0x15   :  { %79 = vmatpush.bf16.msra.mxu0 %v246_v9 }
  0x18   :  { %225 = vmatmul.msk.bf16.vlgmr.msra.gmra.mxu0 %vm64_vm1, %v31_v11 }
  0x80   :  { %v146_v28 = vpop.permute.xlu0 %145 }
  0x81   :  { %v148_v29 = vperm.slane %v146_v28, 0 }
  0x95   :  { %v81_v15 = vpop.f32.mrf.mxu0 }
  0x96   :  { %v82_v16 = vadd.f32 %v256_v14, %v81_v15 }
  0x98   :  { %v85_v17 = vmax.f32 %v82_v16, 0.0 }
  0x9a   :  { %v86_v18 = vpack.c.bf16 %v85_v17, %v85_v17 }
  0x9c   :  { %242 = vmatmul.msk.bf16.vlgmr.msra.gmra.mxu1 %vm123_vm2, %v86_v18 }
  0x9d   :  { %v83_v19 = vpop.f32.mrf.mxu0 }
 0x119   :  { %v136_v23 = vpop.f32.mrf.mxu1 }
 0x11a   :  { %v137_v24 = vadd.f32 %v257_v22, %v136_v23 }
 0x11c   :  { %v140_v25 = vmax.f32 %v137_v24, 0.0 }
 0x11e   :  { %243 = vmatpush.xpose.msk.msra.mxu2 %vm149_vm3, %v140_v25 }
 0x121   :  { %v138_v27 = vpop.f32.mrf.mxu1  ;;  %244 = vmatmul.msk.f32.vlgmr.msra.gmra.mxu2 %vm149_vm3, %v141_v26 }
 0x1a4   :  { %v173_v30 = vpop.f32.mrf.mxu2 }
 0x1a5   :  { %v174_v31 = vadd.f32 %v173_v30, %v148_v29 }
 0x1a7   :  { %v245_v32 = vmul.f32 -1.442695, %v174_v31 }
 0x1a9   :  { %258 = vpow2.f32 %v245_v32 }
 0x1af   :  { %v259_v33 = vpop.eup %258 }
 0x1b0   :  { %v179_v34 = vadd.f32 1.0, %v259_v33 }
 0x1b2   :  { %260 = vrcp.f32 %v179_v34  ;;  %v191_v38 = vand.u32 2147483648, %v179_v34  ;;  %v189_v40 = vand.u32 2147483647, %v179_v34  ;;  %vm185_vm5 = vweird.f32 %v179_v34 }
 0x1b4   :  { %v192_v42 = vor.u32 1.1754944e-38, %v191_v38  ;;  %vm190_vm8 = vcmp.eq.f32.partialorder %v189_v40, 8.507059e+37 }
 0x1b8   :  { %v261_v35 = vpop.eup %260 }
 0x1b9   :  { %v181_v36 = vmul.f32 %v261_v35, %v179_v34  ;;  %vm186_vm4 = vweird.f32 %v261_v35 }
 0x1ba   :  { %vm187_vm6 = vmor %vm185_vm5, %vm186_vm4 }
 0x1bb   :  { %v182_v37 = vsub.f32 1.0, %v181_v36 }
 0x1bd   :  { %v183_v39 = vmul.f32 %v261_v35, %v182_v37 }
 0x1bf   :  { %v184_v41 = vadd.f32 %v261_v35, %v183_v39 }
 0x1c1   :  { %v188_v43 = vsel %vm187_vm6, %v261_v35, %v184_v41 }
 0x1c2   :  { %v193_v44 = vsel %vm190_vm8, %v192_v42, %v188_v43 }
 0x1c3   :  { %196 = vst.msk [vmem:[#allocation3] sm:$0x1] %vm195_vm7, %v193_v44 }
 0x1c4   :  { %207 = dma.vmem_to_hbm [thread:$0]  %s203_s5, 16, %s205_s24, [#allocation4]  }
 0x1c5   :  { %286 = dma.done.wait [#allocation4], 16  }
 0x1c6   :  { %287 = vsyncadd [#allocation4], 4294967280 }
 0x1c7   :  { %212 = vsyncpa [#allocation4], 1 }

</bundles_post_ra>
